<compile_context>
chip_gen: v7x
topology: tpu7x:2x2x1
jax: 0.10.0
libtpu: 0.0.40
codegen_flags: <defaults>
</compile_context>

<pallas_src>
import jax
import jax.numpy as jnp
from jax.experimental import pallas as pl
from jax.experimental.pallas import tpu as pltpu

_LANE = 128  # lane width: padded hidden dim granularity and head output width


def _mlp_kernel(x_ref, w1_ref, wh_ref, b_ref, wf_ref, bf_ref, o_ref):
    """Fused eval-mode MLP forward (BN pre-folded; dropout = identity).

    x_ref:  (TB, IN)        activation tile
    w1_ref: (IN, Hp)        folded Linear 1 (lane-padded hidden dim)
    wh_ref: (3, Hp, Hp)     folded Linear 2..4 (stacked, lane-padded)
    b_ref:  (4, Hp)         folded biases for blocks 1..4
    wf_ref: (Hp, 128)       block5 (+BN) folded into head, zero-padded lanes
    bf_ref: (1, 128)        folded head bias, zero-padded
    o_ref:  (TB, 128)       lane-dense output; column 0 holds the prediction
    """
    h = x_ref[...]

    # block 1: Linear -> BN(folded) -> tanh
    h = jnp.tanh(jnp.dot(h, w1_ref[...], preferred_element_type=jnp.float32)
                 + b_ref[0:1, :])

    # blocks 2-4: Linear -> BN(folded) -> tanh -> Dropout(identity in eval)
    for i in range(3):
        h = jnp.tanh(jnp.dot(h, wh_ref[i], preferred_element_type=jnp.float32)
                     + b_ref[i + 1:i + 2, :])

    # block 5 (Linear -> BN -> Dropout, NO activation) is pre-folded into the
    # head: y = tanh(h @ (W5'@W6) + (b5'@W6 + b6)), computed lane-dense.
    y = jnp.tanh(jnp.dot(h, wf_ref[...], preferred_element_type=jnp.float32)
                 + bf_ref[...])
    o_ref[...] = y.astype(o_ref.dtype)


def mlp_forward(x, packed, *, block_batch=256):
    """Run the fused kernel. `packed` is the dict from fold_and_pack()."""
    w1, wh, b, wf, bf = (packed["w1"], packed["wh"], packed["b"],
                         packed["wf"], packed["bf"])
    B, IN = x.shape
    Hp = w1.shape[1]

    # batch tile: multiple of 8 sublanes, at most block_batch rows
    tb = min(block_batch, max(B, 8))
    tb = ((tb + 7) // 8) * 8
    b_pad = ((B + tb - 1) // tb) * tb
    if b_pad != B:
        x = jnp.pad(x, ((0, b_pad - B), (0, 0)))
    grid = (b_pad // tb,)

    def rep(shape):  # replicated (grid-invariant) operand
        return pl.BlockSpec(shape, lambda i, _n=len(shape): (0,) * _n)

    out = pl.pallas_call(
        _mlp_kernel,
        out_shape=jax.ShapeDtypeStruct((b_pad, _LANE), jnp.float32),
        grid=grid,
        in_specs=[
            pl.BlockSpec((tb, IN), lambda i: (i, 0)),   # x: tiled over batch
            rep((IN, Hp)),                              # W1
            rep((3, Hp, Hp)),                           # W2..W4 stacked
            rep((4, Hp)),                               # biases 1..4
            rep((Hp, _LANE)),                           # fused block5+head weight
            rep((1, _LANE)),                            # fused head bias
        ],
        out_specs=pl.BlockSpec((tb, _LANE), lambda i: (i, 0)),
        compiler_params=pltpu.CompilerParams(
            dimension_semantics=("parallel",),
            vmem_limit_bytes=64 << 20,
        ),
    )(x, w1, wh, b, wf, bf)

    return out[:B, :1]  # lane-dense store in kernel; slice to (B, 1) outside


# ----------------------------------------------------------------------------
# Parameter construction / folding (plain JAX glue, outside the kernel)
# ----------------------------------------------------------------------------

def _xavier_uniform(key, fan_in, fan_out):
    limit = jnp.sqrt(6.0 / (fan_in + fan_out))
    return jax.random.uniform(key, (fan_in, fan_out), jnp.float32, -limit, limit)


def init_params(key, input_size, hidden_size, eps=1e-5):
    """Per-layer (W, b, bn_scale, bn_shift) for blocks 1..5 plus (W6, b6).

    Linear weights: xavier-uniform, biases: zeros.  BatchNorm with fresh
    running stats (mean=0, var=1, gamma=1, beta=0) is pre-reduced to
    scale = gamma/sqrt(var+eps), shift = beta - mean*scale.
    """
    dims = [(input_size, hidden_size)] + [(hidden_size, hidden_size)] * 4
    keys = jax.random.split(key, 6)
    params = []
    for i, (fi, fo) in enumerate(dims):
        w = _xavier_uniform(keys[i], fi, fo)
        b = jnp.zeros((1, fo), jnp.float32)
        gamma = jnp.ones((fo,), jnp.float32)
        beta = jnp.zeros((fo,), jnp.float32)
        r_mean = jnp.zeros((fo,), jnp.float32)
        r_var = jnp.ones((fo,), jnp.float32)
        scale = (gamma / jnp.sqrt(r_var + eps)).reshape(1, fo)
        shift = (beta - r_mean * scale[0]).reshape(1, fo)
        params.append((w, b, scale, shift))
    w6 = _xavier_uniform(keys[5], hidden_size, 1)
    b6 = jnp.zeros((1, 1), jnp.float32)
    params.append((w6, b6))
    return params


def fold_and_pack(params, hidden_size):
    """Fold BN into Linear, fold block5 into the head, pad to lane width."""
    Hp = ((hidden_size + _LANE - 1) // _LANE) * _LANE
    IN = params[0][0].shape[0]

    folded_w, folded_b = [], []
    for (w, b, s, t) in params[:5]:
        folded_w.append(w * s)          # (fi, fo) * (1, fo)
        folded_b.append(b * s + t)      # (1, fo)

    # Block 5 is affine (no activation, dropout=identity) -> compose with head.
    w6, b6 = params[5]
    wf = folded_w[4] @ w6               # (H, 1)
    bf = folded_b[4] @ w6 + b6          # (1, 1)

    def pad2(a, rows, cols):
        r, c = a.shape
        return jnp.pad(a, ((0, rows - r), (0, cols - c)))

    w1p = pad2(folded_w[0], IN, Hp)                                   # (IN, Hp)
    whp = jnp.stack([pad2(folded_w[i], Hp, Hp) for i in range(1, 4)], axis=0)
    bp = jnp.concatenate([pad2(folded_b[i], 1, Hp) for i in range(4)], axis=0)
    wfp = pad2(wf, Hp, _LANE)                                         # (Hp, 128)
    bfp = pad2(bf, 1, _LANE)                                          # (1, 128)
    return dict(w1=w1p, wh=whp, b=bp, wf=wfp, bf=bfp)


def reference_forward(x, params):
    """Pure-JAX reference of the same eval-mode forward (unfolded)."""
    h = x
    for i, (w, b, s, t) in enumerate(params[:5]):
        h = (h @ w + b) * s + t
        if i < 4:  # block 5 has no activation
            h = jnp.tanh(h)
    w6, b6 = params[5]
    return jnp.tanh(h @ w6 + b6)


if __name__ == "__main__":
    INPUT_SIZE = 16
    HIDDEN_SIZE = 32
    BATCH = 8

    key = jax.random.PRNGKey(0)
    kx, kp = jax.random.split(key)
    x = jax.random.normal(kx, (BATCH, INPUT_SIZE), jnp.float32)

    params = init_params(kp, INPUT_SIZE, HIDDEN_SIZE)
    packed = fold_and_pack(params, HIDDEN_SIZE)

    # TODO(synk): training-mode BatchNorm (batch stats) and Dropout masking are
    # not implemented; this is the eval-mode forward (BN folded, dropout=id).
    out = mlp_forward(x, packed)
    out = jax.block_until_ready(out)

    ref = reference_forward(x, params)
    assert out.shape == (BATCH, 1), out.shape
    assert jnp.allclose(out, ref, atol=1e-5, rtol=1e-5), (
        float(jnp.max(jnp.abs(out - ref))))

    print("KERNEL_OK")
</pallas_src>

<mosaic_0001>
module attributes {stable_mosaic.version = 11 : i64} {
  func.func @_mlp_kernel(%arg0: i32, %arg1: memref<8x16xf32, #tpu.memory_space<vmem>>, %arg2: memref<16x128xf32, #tpu.memory_space<vmem>>, %arg3: memref<3x128x128xf32, #tpu.memory_space<vmem>>, %arg4: memref<4x128xf32, #tpu.memory_space<vmem>>, %arg5: memref<128x128xf32, #tpu.memory_space<vmem>>, %arg6: memref<1x128xf32, #tpu.memory_space<vmem>>, %arg7: memref<8x128xf32, #tpu.memory_space<vmem>>) attributes {dimension_semantics = [#tpu.dimension_semantics<parallel>], iteration_bounds = array<i64: 1>, scalar_prefetch = 0 : i64, scratch_operands = 0 : i64, tpu.core_type = #tpu.core_type<tc>, window_params = [{transform_indices = @transform_0, window_bounds = array<i64: 8, 16>}, {pipeline_mode = #tpu.pipeline_mode<synchronous>, transform_indices = @transform_1, window_bounds = array<i64: 16, 128>}, {pipeline_mode = #tpu.pipeline_mode<synchronous>, transform_indices = @transform_2, window_bounds = array<i64: 3, 128, 128>}, {pipeline_mode = #tpu.pipeline_mode<synchronous>, transform_indices = @transform_3, window_bounds = array<i64: 4, 128>}, {pipeline_mode = #tpu.pipeline_mode<synchronous>, transform_indices = @transform_4, window_bounds = array<i64: 128, 128>}, {pipeline_mode = #tpu.pipeline_mode<synchronous>, transform_indices = @transform_5, window_bounds = array<i64: 1, 128>}, {transform_indices = @transform_6, window_bounds = array<i64: 8, 128>}]} {
    %c0 = arith.constant 0 : index
    %c0_0 = arith.constant 0 : index
    %0 = vector.load %arg1[%c0, %c0_0] : memref<8x16xf32, #tpu.memory_space<vmem>>, vector<8x16xf32>
    %c0_1 = arith.constant 0 : index
    %c0_2 = arith.constant 0 : index
    %1 = vector.load %arg2[%c0_1, %c0_2] : memref<16x128xf32, #tpu.memory_space<vmem>>, vector<16x128xf32>
    %cst = arith.constant dense<0.000000e+00> : vector<8x128xf32>
    %2 = tpu.matmul %0, %1, %cst {dimension_numbers = #tpu.dot_dimension_numbers<[1], [0], [0], [1], [0, 0, 1, 1], [], []>} : vector<8x16xf32>, vector<16x128xf32>, vector<8x128xf32> -> vector<8x128xf32>
    %c0_3 = arith.constant 0 : index
    %c0_4 = arith.constant 0 : index
    %3 = vector.load %arg4[%c0_3, %c0_4] : memref<4x128xf32, #tpu.memory_space<vmem>>, vector<1x128xf32>
    %4 = vector.broadcast %3 : vector<1x128xf32> to vector<8x128xf32>
    %5 = arith.addf %2, %4 : vector<8x128xf32>
    %6 = math.tanh %5 : vector<8x128xf32>
    %c0_5 = arith.constant 0 : index
    %c0_6 = arith.constant 0 : index
    %c0_7 = arith.constant 0 : index
    %7 = vector.load %arg3[%c0_5, %c0_6, %c0_7] : memref<3x128x128xf32, #tpu.memory_space<vmem>>, vector<1x128x128xf32>
    %8 = vector.shape_cast %7 : vector<1x128x128xf32> to vector<128x128xf32>
    %cst_8 = arith.constant dense<0.000000e+00> : vector<8x128xf32>
    %9 = tpu.matmul %6, %8, %cst_8 {dimension_numbers = #tpu.dot_dimension_numbers<[1], [0], [0], [1], [0, 0, 1, 1], [], []>} : vector<8x128xf32>, vector<128x128xf32>, vector<8x128xf32> -> vector<8x128xf32>
    %c1 = arith.constant 1 : index
    %c0_9 = arith.constant 0 : index
    %10 = vector.load %arg4[%c1, %c0_9] : memref<4x128xf32, #tpu.memory_space<vmem>>, vector<1x128xf32>
    %11 = vector.broadcast %10 : vector<1x128xf32> to vector<8x128xf32>
    %12 = arith.addf %9, %11 : vector<8x128xf32>
    %13 = math.tanh %12 : vector<8x128xf32>
    %c1_10 = arith.constant 1 : index
    %c0_11 = arith.constant 0 : index
    %c0_12 = arith.constant 0 : index
    %14 = vector.load %arg3[%c1_10, %c0_11, %c0_12] : memref<3x128x128xf32, #tpu.memory_space<vmem>>, vector<1x128x128xf32>
    %15 = vector.shape_cast %14 : vector<1x128x128xf32> to vector<128x128xf32>
    %cst_13 = arith.constant dense<0.000000e+00> : vector<8x128xf32>
    %16 = tpu.matmul %13, %15, %cst_13 {dimension_numbers = #tpu.dot_dimension_numbers<[1], [0], [0], [1], [0, 0, 1, 1], [], []>} : vector<8x128xf32>, vector<128x128xf32>, vector<8x128xf32> -> vector<8x128xf32>
    %c2 = arith.constant 2 : index
    %c0_14 = arith.constant 0 : index
    %17 = vector.load %arg4[%c2, %c0_14] : memref<4x128xf32, #tpu.memory_space<vmem>>, vector<1x128xf32>
    %18 = vector.broadcast %17 : vector<1x128xf32> to vector<8x128xf32>
    %19 = arith.addf %16, %18 : vector<8x128xf32>
    %20 = math.tanh %19 : vector<8x128xf32>
    %c2_15 = arith.constant 2 : index
    %c0_16 = arith.constant 0 : index
    %c0_17 = arith.constant 0 : index
    %21 = vector.load %arg3[%c2_15, %c0_16, %c0_17] : memref<3x128x128xf32, #tpu.memory_space<vmem>>, vector<1x128x128xf32>
    %22 = vector.shape_cast %21 : vector<1x128x128xf32> to vector<128x128xf32>
    %cst_18 = arith.constant dense<0.000000e+00> : vector<8x128xf32>
    %23 = tpu.matmul %20, %22, %cst_18 {dimension_numbers = #tpu.dot_dimension_numbers<[1], [0], [0], [1], [0, 0, 1, 1], [], []>} : vector<8x128xf32>, vector<128x128xf32>, vector<8x128xf32> -> vector<8x128xf32>
    %c3 = arith.constant 3 : index
    %c0_19 = arith.constant 0 : index
    %24 = vector.load %arg4[%c3, %c0_19] : memref<4x128xf32, #tpu.memory_space<vmem>>, vector<1x128xf32>
    %25 = vector.broadcast %24 : vector<1x128xf32> to vector<8x128xf32>
    %26 = arith.addf %23, %25 : vector<8x128xf32>
    %27 = math.tanh %26 : vector<8x128xf32>
    %c0_20 = arith.constant 0 : index
    %c0_21 = arith.constant 0 : index
    %28 = vector.load %arg5[%c0_20, %c0_21] : memref<128x128xf32, #tpu.memory_space<vmem>>, vector<128x128xf32>
    %cst_22 = arith.constant dense<0.000000e+00> : vector<8x128xf32>
    %29 = tpu.matmul %27, %28, %cst_22 {dimension_numbers = #tpu.dot_dimension_numbers<[1], [0], [0], [1], [0, 0, 1, 1], [], []>} : vector<8x128xf32>, vector<128x128xf32>, vector<8x128xf32> -> vector<8x128xf32>
    %c0_23 = arith.constant 0 : index
    %c0_24 = arith.constant 0 : index
    %30 = vector.load %arg6[%c0_23, %c0_24] : memref<1x128xf32, #tpu.memory_space<vmem>>, vector<1x128xf32>
    %31 = vector.broadcast %30 : vector<1x128xf32> to vector<8x128xf32>
    %32 = arith.addf %29, %31 : vector<8x128xf32>
    %33 = math.tanh %32 : vector<8x128xf32>
    %c0_25 = arith.constant 0 : index
    %c0_26 = arith.constant 0 : index
    %34 = vector.load %arg7[%c0_25, %c0_26] : memref<8x128xf32, #tpu.memory_space<vmem>>, vector<8x128xf32>
    tpu.vector_store %arg7[%c0_25, %c0_26], %33 {strides = array<i32>} : memref<8x128xf32, #tpu.memory_space<vmem>>, vector<8x128xf32>,
    return
  }
  func.func @transform_0(%arg0: i32) -> (i32, i32) {
    %c0_i32 = arith.constant 0 : i32
    %c0_i32_0 = arith.constant 0 : i32
    return %arg0, %c0_i32 : i32, i32
  }
  func.func @transform_1(%arg0: i32) -> (i32, i32) {
    %c0_i32 = arith.constant 0 : i32
    %c0_i32_0 = arith.constant 0 : i32
    %c0_i32_1 = arith.constant 0 : i32
    return %c0_i32, %c0_i32_0 : i32, i32
  }
  func.func @transform_2(%arg0: i32) -> (i32, i32, i32) {
    %c0_i32 = arith.constant 0 : i32
    %c0_i32_0 = arith.constant 0 : i32
    %c0_i32_1 = arith.constant 0 : i32
    %c0_i32_2 = arith.constant 0 : i32
    return %c0_i32, %c0_i32_0, %c0_i32_1 : i32, i32, i32
  }
  func.func @transform_3(%arg0: i32) -> (i32, i32) {
    %c0_i32 = arith.constant 0 : i32
    %c0_i32_0 = arith.constant 0 : i32
    %c0_i32_1 = arith.constant 0 : i32
    return %c0_i32, %c0_i32_0 : i32, i32
  }
  func.func @transform_4(%arg0: i32) -> (i32, i32) {
    %c0_i32 = arith.constant 0 : i32
    %c0_i32_0 = arith.constant 0 : i32
    %c0_i32_1 = arith.constant 0 : i32
    return %c0_i32, %c0_i32_0 : i32, i32
  }
  func.func @transform_5(%arg0: i32) -> (i32, i32) {
    %c0_i32 = arith.constant 0 : i32
    %c0_i32_0 = arith.constant 0 : i32
    %c0_i32_1 = arith.constant 0 : i32
    return %c0_i32, %c0_i32_0 : i32, i32
  }
  func.func @transform_6(%arg0: i32) -> (i32, i32) {
    %c0_i32 = arith.constant 0 : i32
    %c0_i32_0 = arith.constant 0 : i32
    return %arg0, %c0_i32 : i32, i32
  }
}

</mosaic_0001>

<bundles_post_ra>
// kernel: tpu_custom_call.1
= control target key start
LH: loop header
LB: loop body
LE: loop exit
PB: predicated region body
PF: predicated region fallthrough
CT: control target
= control target key end

     0   :  { %11 = vsyncpa [#allocation3], 0  ;;  %s1266_s0 = inlined_call_operand.hbm [shape: f32[8,16], index: 0, kind: input, shape index: {}]   ;;  %s1267_s1 = inlined_call_operand.hbm [shape: f32[16,128], index: 1, kind: input, shape index: {}]   ;;  %s1268_s2 = inlined_call_operand.hbm [shape: f32[3,128,128], index: 2, kind: input, shape index: {}]   ;;  %s1269_s3 = inlined_call_operand.hbm [shape: f32[4,128], index: 3, kind: input, shape index: {}]   ;;  %s1270_s4 = inlined_call_operand.hbm [shape: f32[128,128], index: 4, kind: input, shape index: {}]   ;;  %s1271_s5 = inlined_call_operand.hbm [shape: f32[1,128], index: 5, kind: input, shape index: {}]   ;;  %s1272_s6 = inlined_call_operand.hbm [shape: f32[8,128], index: 6, kind: output, shape index: {}]  }
   0x1   :  { %12 = vsyncpa [#allocation6], 0 }
   0x2   :  { %13 = vsyncpa [#allocation9], 0 }
   0x3   :  { %14 = vsyncpa [#allocation12], 0 }
   0x4   :  { %15 = vsyncpa [#allocation4], 0  ;;  %s1083_s21 = smov [#allocation5]   ;;  %s919_s25 = scalar_lea.hbm %s1267_s1, 256 }
   0x5   :  { %s31_s22 = sshll.u32 %s1083_s21, 4  ;;  %p920_p0 = scmp.ne.s32.totalorder %s1267_s1, %s919_s25  ;;  %s32_s22 = int_to_ptr.vmem [resolvable:$true] %s31_s22 }
   0x6   :  { %p923_p1 = scmp.lt.u32.totalorder %s919_s25, %s1267_s1 }
   0x8   :  { %p925_p2 = pnand %p923_p1, %p920_p0 }
   0xa   :  { %928 = shalt.err (!%p925_p2)
}
   0xb   :  { %s929_s30 = scalar_lea.vmem %s32_s22, 256  ;;  %p934_p4 = scmp.lt.s32.totalorder %s32_s22, %s32_s22 }
   0xc   :  { %p930_p3 = scmp.ne.s32.totalorder %s32_s22, %s929_s30  ;;  %p935_p5 = scmp.lt.s32.totalorder %s929_s30, %s929_s30 }
   0xe   :  { %p936_p6 = por %p935_p5, %p934_p4 }
  0x10   :  { %p937_p7 = pnand %p936_p6, %p930_p3 }
  0x12   :  { %940 = shalt.err (!%p937_p7)
}
  0x13   :  { %s1084_s7 = smov 128   ;;  %s1085_s8 = smov 8  }
  0x14   :  { %37 = dma.hbm_to_vmem [thread:$0]  %s1267_s1, 256, %s32_s22, [#allocation6], %s1084_s7, %s1084_s7, %s1085_s8  }
  0x15   :  { %s1086_s11 = smov [#allocation8]   ;;  %s1087_s13 = smov [#allocation2]  }
  0x16   :  { %s56_s12 = sshll.u32 %s1086_s11, 4  ;;  %s22_s14 = sshll.u32 %s1087_s13, 4  ;;  %s57_s12 = int_to_ptr.vmem [resolvable:$true] %s56_s12  ;;  %s23_s14 = int_to_ptr.vmem [resolvable:$true] %s22_s14 }
  0x17   :  { %s941_s17 = scalar_lea.hbm %s1269_s3, 64 }
  0x18   :  { %p942_p8 = scmp.ne.s32.totalorder %s1269_s3, %s941_s17  ;;  %p945_p9 = scmp.lt.u32.totalorder %s941_s17, %s1269_s3 }
  0x1a   :  { %p947_p10 = pnand %p945_p9, %p942_p8 }
  0x1c   :  { %950 = shalt.err (!%p947_p10)
}
  0x1d   :  { %s951_s1 = scalar_lea.vmem %s57_s12, 64  ;;  %p956_p12 = scmp.lt.s32.totalorder %s57_s12, %s57_s12 }
  0x1e   :  { %p952_p11 = scmp.ne.s32.totalorder %s57_s12, %s951_s1  ;;  %p957_p13 = scmp.lt.s32.totalorder %s951_s1, %s951_s1 }
  0x20   :  { %p958_p0 = por %p957_p13, %p956_p12 }
  0x22   :  { %p959_p1 = pnand %p958_p0, %p952_p11 }
  0x24   :  { %962 = shalt.err (!%p959_p1)
}
  0x25   :  { %59 = dma.hbm_to_vmem [thread:$0]  %s1269_s3, 64, %s57_s12, [#allocation9]  }
  0x26   :  { %s963_s26 = scalar_lea.hbm %s1266_s0, 128 }
  0x27   :  { %p964_p2 = scmp.ne.s32.totalorder %s1266_s0, %s963_s26  ;;  %p967_p3 = scmp.lt.u32.totalorder %s963_s26, %s1266_s0 }
  0x29   :  { %p969_p4 = pnand %p967_p3, %p964_p2 }
  0x2b   :  { %972 = shalt.err (!%p969_p4)
}
  0x2c   :  { %s973_s9 = scalar_lea.vmem %s23_s14, 128  ;;  %p978_p6 = scmp.lt.s32.totalorder %s23_s14, %s23_s14 }
  0x2d   :  { %p974_p5 = scmp.ne.s32.totalorder %s23_s14, %s973_s9  ;;  %p979_p7 = scmp.lt.s32.totalorder %s973_s9, %s973_s9 }
  0x2f   :  { %p980_p8 = por %p979_p7, %p978_p6 }
  0x31   :  { %p981_p9 = pnand %p980_p8, %p974_p5 }
  0x33   :  { %984 = shalt.err (!%p981_p9)
}
  0x34   :  { %25 = dma.hbm_to_vmem [thread:$0]  %s1266_s0, 128, %s23_s14, [#allocation3]  }
  0x35   :  { %s1088_s11 = smov [#allocation7]   ;;  %s1089_s13 = smov [#allocation10]  }
  0x36   :  { %s43_s12 = sshll.u32 %s1088_s11, 4  ;;  %s65_s15 = sshll.u32 %s1089_s13, 4  ;;  %s44_s12 = int_to_ptr.vmem [resolvable:$true] %s43_s12  ;;  %s66_s15 = int_to_ptr.vmem [resolvable:$true] %s65_s15 }
  0x37   :  { %s985_s18 = scalar_lea.hbm %s1268_s2, 6144 }
  0x38   :  { %p986_p10 = scmp.ne.s32.totalorder %s1268_s2, %s985_s18  ;;  %p989_p11 = scmp.lt.u32.totalorder %s985_s18, %s1268_s2 }
  0x3a   :  { %p991_p12 = pnand %p989_p11, %p986_p10 }
  0x3c   :  { %994 = shalt.err (!%p991_p12)
}
  0x3d   :  { %s995_s0 = scalar_lea.vmem %s44_s12, 6144  ;;  %p1000_p0 = scmp.lt.s32.totalorder %s44_s12, %s44_s12 }
  0x3e   :  { %p996_p13 = scmp.ne.s32.totalorder %s44_s12, %s995_s0  ;;  %p1001_p1 = scmp.lt.s32.totalorder %s995_s0, %s995_s0 }
  0x40   :  { %p1002_p2 = por %p1001_p1, %p1000_p0 }
  0x42   :  { %p1003_p3 = pnand %p1002_p2, %p996_p13 }
  0x44   :  { %1006 = shalt.err (!%p1003_p3)
}
  0x45   :  { %49 = dma.hbm_to_vmem [thread:$0]  %s1268_s2, 6144, %s44_s12, [#allocation6], %s1084_s7, %s1084_s7, %s1085_s8  }
  0x46   :  { %s1007_s25 = scalar_lea.hbm %s1270_s4, 2048 }
  0x47   :  { %p1008_p4 = scmp.ne.s32.totalorder %s1270_s4, %s1007_s25  ;;  %p1011_p5 = scmp.lt.u32.totalorder %s1007_s25, %s1270_s4 }
  0x49   :  { %p1013_p6 = pnand %p1011_p5, %p1008_p4 }
  0x4b   :  { %1016 = shalt.err (!%p1013_p6)
}
  0x4c   :  { %s1017_s30 = scalar_lea.vmem %s66_s15, 2048  ;;  %p1022_p8 = scmp.lt.s32.totalorder %s66_s15, %s66_s15 }
  0x4d   :  { %p1018_p7 = scmp.ne.s32.totalorder %s66_s15, %s1017_s30  ;;  %p1023_p9 = scmp.lt.s32.totalorder %s1017_s30, %s1017_s30 }
  0x4f   :  { %p1024_p10 = por %p1023_p9, %p1022_p8 }
  0x51   :  { %p1025_p11 = pnand %p1024_p10, %p1018_p7 }
  0x53   :  { %1028 = shalt.err (!%p1025_p11)
}
  0x54   :  { %71 = dma.hbm_to_vmem [thread:$0]  %s1270_s4, 2048, %s66_s15, [#allocation9], %s1084_s7, %s1084_s7, %s1085_s8  }
  0x55   :  { %s1090_s3 = smov [#allocation11]   ;;  %s1029_s13 = scalar_lea.hbm %s1271_s5, 16 }
  0x56   :  { %s78_s10 = sshll.u32 %s1090_s3, 4  ;;  %p1030_p12 = scmp.ne.s32.totalorder %s1271_s5, %s1029_s13  ;;  %s79_s10 = int_to_ptr.vmem [resolvable:$true] %s78_s10 }
  0x57   :  { %p1033_p13 = scmp.lt.u32.totalorder %s1029_s13, %s1271_s5 }
  0x59   :  { %p1035_p0 = pnand %p1033_p13, %p1030_p12 }
  0x5b   :  { %1038 = shalt.err (!%p1035_p0)
}
  0x5c   :  { %s1039_s20 = scalar_lea.vmem %s79_s10, 16  ;;  %s1043_s4 = scalar_lea.vmem %s79_s10, 32 }
  0x5d   :  { %p1040_p1 = scmp.ne.s32.totalorder %s79_s10, %s1039_s20  ;;  %p1044_p2 = scmp.lt.s32.totalorder %s79_s10, %s79_s10 }
  0x5e   :  { %p1045_p3 = scmp.lt.s32.totalorder %s1043_s4, %s1039_s20 }
  0x60   :  { %p1046_p4 = por %p1045_p3, %p1044_p2 }
  0x62   :  { %p1047_p5 = pnand %p1046_p4, %p1040_p1 }
  0x64   :  { %1050 = shalt.err (!%p1047_p5)
}
  0x65   :  { %81 = dma.hbm_to_vmem [thread:$0]  %s1271_s5, 16, %s79_s10, [#allocation12]  }
  0x66   :  { %1073 = dma.done.wait [#allocation3], 128  }
  0x67   :  { %1074 = vsyncadd [#allocation3], 4294967168 }
  0x68   :  { %1075 = dma.done.wait [#allocation6], 6400  }
  0x69   :  { %1076 = vsyncadd [#allocation6], 4294960896 }
  0x6a   :  { %1077 = dma.done.wait [#allocation9], 2112  }
  0x6b   :  { %1078 = vsyncadd [#allocation9], 4294965184 }
  0x6c   :  { %1079 = dma.done.wait [#allocation12], 16  }
  0x6d   :  { %1080 = vsyncadd [#allocation12], 4294967280  ;;  %v1091_v0 = vmov 0.0|0.0   ;;  %vm1092_vm0 = vmmov 0   ;;  %v1093_v1 = vmov 0.0   ;;  %v101_v2 = vld [vmem:[#allocation5] sm:$0xff] }
  0x6e   :  { %798 = vmatprep.subr.bf16.mxu0 %v1091_v0  ;;  %655 = vmatprep.mubr.msk.f32.mxu0 %vm1092_vm0, %v1093_v1  ;;  %v102_v3 = vld [vmem:[#allocation5 + $0x8] sm:$0xff]  ;;  %v183_v5 = vld [vmem:[#allocation7] sm:$0xff]  ;;  %v184_v6 = vld [vmem:[#allocation7 + $0x8] sm:$0xff]  ;;  %vm108_vm1 = vcmask 130048   ;;  %s1094_s5 = smov [#allocation13]  }
  0x6f   :  { %801 = vmatprep.subr.bf16.mxu1 %v1091_v0  ;;  %690 = vmatprep.mubr.msk.f32.mxu1 %vm1092_vm0, %v1093_v1  ;;  %v799_v4 = vpack.c.bf16 %v102_v3, %v101_v2  ;;  %v185_v7 = vld [vmem:[#allocation7 + $0x10] sm:$0xff]  ;;  %v802_v8 = vpack.c.bf16 %v184_v6, %v183_v5  ;;  %v186_v9 = vld [vmem:[#allocation7 + $0x18] sm:$0xff]  ;;  %v100_v10 = vld [vmem:[#allocation2] sm:$0xff]  ;;  %s562_s15 = sshll.u32 %s1094_s5, 4  ;;  %s563_s15 = int_to_ptr.vmem [resolvable:$true] %s562_s15 }
  0x70   :  { %v805_v11 = vpack.c.bf16 %v186_v9, %v185_v7  ;;  %v187_v12 = vld [vmem:[#allocation7 + $0x20] sm:$0xff]  ;;  %v188_v13 = vld [vmem:[#allocation7 + $0x28] sm:$0xff]  ;;  %v189_v15 = vld [vmem:[#allocation7 + $0x30] sm:$0xff]  ;;  %s1051_s21 = scalar_lea.vmem %s563_s15, 128  ;;  %p1056_p7 = scmp.lt.s32.totalorder %s563_s15, %s563_s15 }
  0x71   :  { %800 = vmatpush3.bf16.msra.mxu0 %v799_v4  ;;  %803 = vmatpush3.bf16.msra.mxu1 %v802_v8  ;;  %v808_v14 = vpack.c.bf16 %v188_v13, %v187_v12  ;;  %v190_v16 = vld [vmem:[#allocation7 + $0x38] sm:$0xff]  ;;  %v191_v18 = vld [vmem:[#allocation7 + $0x40] sm:$0xff]  ;;  %v192_v19 = vld [vmem:[#allocation7 + $0x48] sm:$0xff]  ;;  %p1052_p6 = scmp.ne.s32.totalorder %s563_s15, %s1051_s21  ;;  %p1057_p8 = scmp.lt.s32.totalorder %s1051_s21, %s1051_s21 }
  0x72   :  { %825 = vmatprep.subr.bf16.mxu0 %v1091_v0  ;;  %804 = vmatprep.subr.bf16.mxu1 %v1091_v0  ;;  %v811_v17 = vpack.c.bf16 %v190_v16, %v189_v15  ;;  %v814_v20 = vpack.c.bf16 %v192_v19, %v191_v18  ;;  %v193_v21 = vld [vmem:[#allocation7 + $0x50] sm:$0xff]  ;;  %v194_v22 = vld [vmem:[#allocation7 + $0x58] sm:$0xff]  ;;  %v195_v24 = vld [vmem:[#allocation7 + $0x60] sm:$0xff] }
  0x73   :  { %v817_v23 = vpack.c.bf16 %v194_v22, %v193_v21  ;;  %v196_v25 = vld [vmem:[#allocation7 + $0x68] sm:$0xff]  ;;  %v197_v27 = vld [vmem:[#allocation7 + $0x70] sm:$0xff]  ;;  %v198_v28 = vld [vmem:[#allocation7 + $0x78] sm:$0xff]  ;;  %p1058_p9 = por %p1057_p8, %p1056_p7 }
  0x74   :  { %656 = vmatmul.mubr.msk.f32.vlgmr.msra.gmra.mrb[0].mxu0 %vm108_vm1, %v100_v10  ;;  %v820_v26 = vpack.c.bf16 %v196_v25, %v195_v24  ;;  %v823_v29 = vpack.c.bf16 %v198_v28, %v197_v27  ;;  %v276_v30 = vld [vmem:[#allocation7 + $0x80] sm:$0xff]  ;;  %v277_v31 = vld [vmem:[#allocation7 + $0x88] sm:$0xff]  ;;  %v278_v32 = vld [vmem:[#allocation7 + $0x90] sm:$0xff] }
  0x75   :  { %725 = vmatprep.mubr.msk.f32.mxu0 %vm1092_vm0, %v1093_v1  ;;  %806 = vmatpush3.bf16.msra.mxu1 %v805_v11  ;;  %v826_v33 = vpack.c.bf16 %v277_v31, %v276_v30  ;;  %v279_v34 = vld [vmem:[#allocation7 + $0x98] sm:$0xff]  ;;  %v280_v36 = vld [vmem:[#allocation7 + $0xa0] sm:$0xff]  ;;  %v281_v37 = vld [vmem:[#allocation7 + $0xa8] sm:$0xff]  ;;  %p1059_p10 = pnand %p1058_p9, %p1052_p6 }
  0x76   :  { %807 = vmatprep.subr.bf16.mxu1 %v1091_v0  ;;  %v829_v35 = vpack.c.bf16 %v279_v34, %v278_v32  ;;  %v832_v38 = vpack.c.bf16 %v281_v37, %v280_v36  ;;  %v282_v39 = vld [vmem:[#allocation7 + $0xb0] sm:$0xff]  ;;  %v283_v40 = vld [vmem:[#allocation7 + $0xb8] sm:$0xff]  ;;  %v284_v42 = vld [vmem:[#allocation7 + $0xc0] sm:$0xff] }
  0x77   :  { %827 = vmatpush3.bf16.msra.mxu0 %v826_v33  ;;  %v835_v41 = vpack.c.bf16 %v283_v40, %v282_v39  ;;  %v285_v43 = vld [vmem:[#allocation7 + $0xc8] sm:$0xff]  ;;  %v574_v45 = vld [vmem:[#allocation8] ss:$0 sm:$0xff]  ;;  %v286_v50 = vld [vmem:[#allocation7 + $0xd0] sm:$0xff] }
  0x78   :  { %828 = vmatprep.subr.bf16.mxu0 %v1091_v0  ;;  %v838_v44 = vpack.c.bf16 %v285_v43, %v284_v42  ;;  %v287_v51 = vld [vmem:[#allocation7 + $0xd8] sm:$0xff]  ;;  %v288_v53 = vld [vmem:[#allocation7 + $0xe0] sm:$0xff]  ;;  %v289_v54 = vld [vmem:[#allocation7 + $0xe8] sm:$0xff] }
  0x79   :  { %809 = vmatpush3.bf16.msra.mxu1 %v808_v14  ;;  %v841_v52 = vpack.c.bf16 %v287_v51, %v286_v50  ;;  %v844_v55 = vpack.c.bf16 %v289_v54, %v288_v53  ;;  %v290_v56 = vld [vmem:[#allocation7 + $0xf0] sm:$0xff]  ;;  %v291_v57 = vld [vmem:[#allocation7 + $0xf8] sm:$0xff]  ;;  %v369_v59 = vld [vmem:[#allocation7 + $0x100] sm:$0xff] }
  0x7a   :  { %810 = vmatprep.subr.bf16.mxu1 %v1091_v0  ;;  %v847_v58 = vpack.c.bf16 %v291_v57, %v290_v56  ;;  %v370_v60 = vld [vmem:[#allocation7 + $0x108] sm:$0xff]  ;;  %v371_v61 = vld [vmem:[#allocation7 + $0x110] sm:$0xff]  ;;  %v372_v63 = vld [vmem:[#allocation7 + $0x118] sm:$0xff] }
  0x7b   :  { %830 = vmatpush3.bf16.msra.mxu0 %v829_v35  ;;  %v850_v62 = vpack.c.bf16 %v370_v60, %v369_v59  ;;  %v853_v2 = vpack.c.bf16 %v372_v63, %v371_v61  ;;  %v373_v3 = vld [vmem:[#allocation7 + $0x120] sm:$0xff]  ;;  %v374_v4 = vld [vmem:[#allocation7 + $0x128] sm:$0xff]  ;;  %v375_v6 = vld [vmem:[#allocation7 + $0x130] sm:$0xff] }
  0x7c   :  { %831 = vmatprep.subr.bf16.mxu0 %v1091_v0  ;;  %v856_v5 = vpack.c.bf16 %v374_v4, %v373_v3  ;;  %v376_v7 = vld [vmem:[#allocation7 + $0x138] sm:$0xff]  ;;  %v377_v9 = vld [vmem:[#allocation7 + $0x140] sm:$0xff]  ;;  %v378_v10 = vld [vmem:[#allocation7 + $0x148] sm:$0xff] }
  0x7d   :  { %812 = vmatpush3.bf16.msra.mxu1 %v811_v17  ;;  %v859_v8 = vpack.c.bf16 %v376_v7, %v375_v6  ;;  %v862_v11 = vpack.c.bf16 %v378_v10, %v377_v9  ;;  %v576_v12 = vld [vmem:[#allocation8 + $0x1] ss:$0 sm:$0xff]  ;;  %v379_v17 = vld [vmem:[#allocation7 + $0x150] sm:$0xff]  ;;  %v380_v18 = vld [vmem:[#allocation7 + $0x158] sm:$0xff] }
  0x7e   :  { %813 = vmatprep.subr.bf16.mxu1 %v1091_v0  ;;  %v865_v19 = vpack.c.bf16 %v380_v18, %v379_v17  ;;  %v382_v21 = vld [vmem:[#allocation7 + $0x168] sm:$0xff]  ;;  %v384_v24 = vld [vmem:[#allocation7 + $0x178] sm:$0xff]  ;;  %v577_v40 = vld [vmem:[#allocation8 + $0x2] ss:$0 sm:$0xff] }
  0x7f   :  { %833 = vmatpush3.bf16.msra.mxu0 %v832_v38  ;;  %v462_v27 = vld [vmem:[#allocation10 + $0x8] sm:$0xff]  ;;  %v463_v28 = vld [vmem:[#allocation10 + $0x10] sm:$0xff]  ;;  %v465_v31 = vld [vmem:[#allocation10 + $0x20] sm:$0xff] }
  0x80   :  { %834 = vmatprep.subr.bf16.mxu0 %v1091_v0  ;;  %v466_v32 = vld [vmem:[#allocation10 + $0x28] sm:$0xff]  ;;  %v467_v34 = vld [vmem:[#allocation10 + $0x30] sm:$0xff]  ;;  %v468_v35 = vld [vmem:[#allocation10 + $0x38] sm:$0xff] }
  0x81   :  { %815 = vmatpush3.bf16.msra.mxu1 %v814_v20  ;;  %v381_v20 = vld [vmem:[#allocation7 + $0x160] sm:$0xff]  ;;  %v880_v33 = vpack.c.bf16 %v466_v32, %v465_v31  ;;  %v883_v36 = vpack.c.bf16 %v468_v35, %v467_v34  ;;  %v470_v38 = vld [vmem:[#allocation10 + $0x48] sm:$0xff]  ;;  %v475_v51 = vld [vmem:[#allocation10 + $0x70] sm:$0xff] }
  0x82   :  { %816 = vmatprep.subr.bf16.mxu1 %v1091_v0  ;;  %v868_v22 = vpack.c.bf16 %v382_v21, %v381_v20  ;;  %v469_v37 = vld [vmem:[#allocation10 + $0x40] sm:$0xff]  ;;  %v578_v54 = vld [vmem:[#allocation8 + $0x3] ss:$0 sm:$0xff] }
  0x83   :  { %836 = vmatpush3.bf16.msra.mxu0 %v835_v41  ;;  %v886_v39 = vpack.c.bf16 %v470_v38, %v469_v37  ;;  %v579_v59 = vld [vmem:[#allocation11] ss:$0 sm:$0xff] }
  0x84   :  { %837 = vmatprep.subr.bf16.mxu0 %v1091_v0 }
  0x85   :  { %818 = vmatpush3.bf16.msra.mxu1 %v817_v23  ;;  %v383_v23 = vld [vmem:[#allocation7 + $0x170] sm:$0xff] }
  0x86   :  { %819 = vmatprep.subr.bf16.mxu1 %v1091_v0  ;;  %v871_v25 = vpack.c.bf16 %v384_v24, %v383_v23 }
  0x87   :  { %839 = vmatpush3.bf16.msra.mxu0 %v838_v44 }
  0x88   :  { %840 = vmatprep.subr.bf16.mxu0 %v1091_v0 }
  0x89   :  { %821 = vmatpush3.bf16.msra.mxu1 %v820_v26  ;;  %v461_v26 = vld [vmem:[#allocation10] sm:$0xff] }
  0x8a   :  { %822 = vmatprep.subr.bf16.mxu1 %v1091_v0 }
  0x8b   :  { %842 = vmatpush3.bf16.msra.mxu0 %v841_v52  ;;  %v476_v52 = vld [vmem:[#allocation10 + $0x78] sm:$0xff] }
  0x8c   :  { %843 = vmatprep.subr.bf16.mxu0 %v1091_v0  ;;  %v895_v53 = vpack.c.bf16 %v476_v52, %v475_v51 }
  0x8d   :  { %824 = vmatpush3.bf16.msra.mxu1 %v823_v29  ;;  %v464_v29 = vld [vmem:[#allocation10 + $0x18] sm:$0xff] }
  0x8e   :  { %849 = vmatprep.subr.bf16.mxu1 %v1091_v0  ;;  %v877_v30 = vpack.c.bf16 %v464_v29, %v463_v28 }
  0x8f   :  { %845 = vmatpush3.bf16.msra.mxu0 %v844_v55 }
  0x90   :  { %846 = vmatprep.subr.bf16.mxu0 %v1091_v0 }
  0x93   :  { %848 = vmatpush3.bf16.msra.mxu0 %v847_v58 }
  0x94   :  { %873 = vmatprep.subr.bf16.mxu0 %v1091_v0 }
 0x147   :  { %v178_v46 = vpop.f32.mrb[0].mxu0 }
 0x148   :  { %v179_v47 = vadd.f32 %v574_v45, %v178_v46  ;;  %v657_v48 = vpop.f32.mrb[1].mxu0  ;;  %v471_v45 = vld [vmem:[#allocation10 + $0x50] sm:$0xff]  ;;  %v472_v46 = vld [vmem:[#allocation10 + $0x58] sm:$0xff] }
 0x149   :  { %v473_v48 = vld [vmem:[#allocation10 + $0x60] sm:$0xff] }
 0x14a   :  { %909 = vtanh.f32 %v179_v47  ;;  %v889_v47 = vpack.c.bf16 %v472_v46, %v471_v45 }
 0x154   :  { %v910_v49 = vpop.eup %909 }
 0x155   :  { %691 = vmatmul.mubr.f32.vlgmr.msra.gmra.mrb[0].mxu1 %v910_v49  ;;  %v474_v49 = vld [vmem:[#allocation10 + $0x68] sm:$0xff] }
 0x156   :  { %760 = vmatprep.mubr.msk.f32.mxu1 %vm1092_vm0, %v1093_v1  ;;  %851 = vmatpush3.bf16.msra.mxu1 %v850_v62  ;;  %v892_v50 = vpack.c.bf16 %v474_v49, %v473_v48 }
 0x157   :  { %852 = vmatprep.subr.bf16.mxu1 %v1091_v0 }
 0x15a   :  { %854 = vmatpush3.bf16.msra.mxu1 %v853_v2 }
 0x15b   :  { %855 = vmatprep.subr.bf16.mxu1 %v1091_v0 }
 0x15e   :  { %857 = vmatpush3.bf16.msra.mxu1 %v856_v5 }
 0x15f   :  { %858 = vmatprep.subr.bf16.mxu1 %v1091_v0 }
 0x162   :  { %860 = vmatpush3.bf16.msra.mxu1 %v859_v8 }
 0x163   :  { %861 = vmatprep.subr.bf16.mxu1 %v1091_v0 }
 0x166   :  { %863 = vmatpush3.bf16.msra.mxu1 %v862_v11 }
 0x167   :  { %864 = vmatprep.subr.bf16.mxu1 %v1091_v0 }
 0x16a   :  { %866 = vmatpush3.bf16.msra.mxu1 %v865_v19 }
 0x16b   :  { %867 = vmatprep.subr.bf16.mxu1 %v1091_v0 }
 0x16e   :  { %869 = vmatpush3.bf16.msra.mxu1 %v868_v22 }
 0x16f   :  { %870 = vmatprep.subr.bf16.mxu1 %v1091_v0 }
 0x172   :  { %872 = vmatpush3.bf16.msra.mxu1 %v871_v25 }
 0x228   :  { %v270_v13 = vpop.f32.mrb[0].mxu1 }
 0x229   :  { %v271_v14 = vadd.f32 %v576_v12, %v270_v13  ;;  %v692_v15 = vpop.f32.mrb[1].mxu1 }
 0x22b   :  { %911 = vtanh.f32 %v271_v14 }
 0x235   :  { %v912_v16 = vpop.eup %911 }
 0x236   :  { %726 = vmatmul.mubr.f32.vlgmr.msra.gmra.mrb[2].mxu0 %v912_v16 }
 0x237   :  { %795 = vmatprep.mubr.msk.f32.mxu0 %vm1092_vm0, %v1093_v1  ;;  %v874_v1 = vpack.c.bf16 %v462_v27, %v461_v26 }
 0x239   :  { %875 = vmatpush3.bf16.msra.mxu0 %v874_v1 }
 0x23a   :  { %876 = vmatprep.subr.bf16.mxu0 %v1091_v0 }
 0x23d   :  { %878 = vmatpush3.bf16.msra.mxu0 %v877_v30 }
 0x23e   :  { %879 = vmatprep.subr.bf16.mxu0 %v1091_v0 }
 0x241   :  { %881 = vmatpush3.bf16.msra.mxu0 %v880_v33 }
 0x242   :  { %882 = vmatprep.subr.bf16.mxu0 %v1091_v0 }
 0x245   :  { %884 = vmatpush3.bf16.msra.mxu0 %v883_v36 }
 0x246   :  { %885 = vmatprep.subr.bf16.mxu0 %v1091_v0 }
 0x249   :  { %887 = vmatpush3.bf16.msra.mxu0 %v886_v39 }
 0x24a   :  { %888 = vmatprep.subr.bf16.mxu0 %v1091_v0 }
 0x24d   :  { %890 = vmatpush3.bf16.msra.mxu0 %v889_v47 }
 0x24e   :  { %891 = vmatprep.subr.bf16.mxu0 %v1091_v0 }
 0x251   :  { %893 = vmatpush3.bf16.msra.mxu0 %v892_v50 }
 0x252   :  { %894 = vmatprep.subr.bf16.mxu0 %v1091_v0 }
 0x255   :  { %896 = vmatpush3.bf16.msra.mxu0 %v895_v53 }
 0x309   :  { %v363_v41 = vpop.f32.mrb[2].mxu0 }
 0x30a   :  { %v364_v42 = vadd.f32 %v577_v40, %v363_v41  ;;  %v727_v43 = vpop.f32.mrb[3].mxu0 }
 0x30c   :  { %913 = vtanh.f32 %v364_v42 }
 0x316   :  { %v914_v44 = vpop.eup %913 }
 0x317   :  { %761 = vmatmul.mubr.f32.vlgmr.msra.gmra.mrb[2].mxu1 %v914_v44 }
 0x3ea   :  { %v456_v55 = vpop.f32.mrb[2].mxu1 }
 0x3eb   :  { %v457_v56 = vadd.f32 %v578_v54, %v456_v55  ;;  %v762_v57 = vpop.f32.mrb[3].mxu1 }
 0x3ed   :  { %915 = vtanh.f32 %v457_v56 }
 0x3f7   :  { %v916_v58 = vpop.eup %915 }
 0x3f8   :  { %796 = vmatmul.mubr.f32.vlgmr.msra.gmra.mrb[4].mxu0 %v916_v58 }
 0x4cb   :  { %v550_v60 = vpop.f32.mrb[4].mxu0 }
 0x4cc   :  { %v551_v61 = vadd.f32 %v579_v59, %v550_v60  ;;  %v797_v62 = vpop.f32.mrb[5].mxu0 }
 0x4ce   :  { %917 = vtanh.f32 %v551_v61 }
 0x4d8   :  { %v918_v63 = vpop.eup %917 }
 0x4d9   :  { %555 = vst [vmem:[#allocation13] sm:$0xff] %v918_v63 }
 0x4da   :  { %1062 = shalt.err (!%p1059_p10)
}
 0x4db   :  { %s1063_s14 = scalar_lea.hbm %s1272_s6, 128 }
 0x4dc   :  { %p1064_p11 = scmp.ne.s32.totalorder %s1272_s6, %s1063_s14  ;;  %p1067_p12 = scmp.lt.u32.totalorder %s1063_s14, %s1272_s6 }
 0x4de   :  { %p1069_p13 = pnand %p1067_p12, %p1064_p11 }
 0x4e0   :  { %1072 = shalt.err (!%p1069_p13)
}
 0x4e1   :  { %565 = dma.vmem_to_hbm [thread:$0]  %s563_s15, 128, %s1272_s6, [#allocation4]  }
 0x4e2   :  { %1081 = dma.done.wait [#allocation4], 128  }
 0x4e3   :  { %1082 = vsyncadd [#allocation4], 4294967168 }
 0x4e4   :  { %569 = vsyncpa [#allocation3], 1 }
 0x4e5   :  { %570 = vsyncpa [#allocation6], 1 }
 0x4e6   :  { %571 = vsyncpa [#allocation9], 1 }
 0x4e7   :  { %572 = vsyncpa [#allocation12], 1 }
 0x4e8   :  { %573 = vsyncpa [#allocation4], 1 }

</bundles_post_ra>
